<compile_context>
chip_gen: v7x
topology: tpu7x:2x2x1
jax: 0.10.0
libtpu: 0.0.40
codegen_flags: <defaults>
</compile_context>

<pallas_src>
import jax
import jax.numpy as jnp
from jax import lax
from jax.experimental import pallas as pl
from jax.experimental.pallas import tpu as pltpu


def _decoder_kernel(x_ref, wt_ref, bt_ref, out_ref):
    # x_ref:  (tm, H)  activation rows       wt_ref: (C, H)  fused weight^T
    # bt_ref: (C, 1)   fused bias (column)   out_ref:(C, tm) lane-dense out
    # "NT"-layout dot (contract both on H): keeps M on the lane axis of the
    # store (wide unmasked vst) and avoids any transpose of the activations.
    y = lax.dot_general(
        wt_ref[...], x_ref[...],
        dimension_numbers=(((1,), (1,)), ((), ())),
        preferred_element_type=jnp.float32,
    )
    out_ref[...] = (y + bt_ref[...]).astype(out_ref.dtype)


def _pick_tm(M, H, C, in_itemsize, vmem_tile_budget=12 << 20):
    """Largest lane-aligned row tile whose double-buffered in+out tiles fit
    the VMEM budget, preferring >=2 grid steps so the "parallel" axis can be
    sharded across v7x's two TensorCores.  Partial trailing blocks are fine:
    Pallas clamps the input DMA and masks the OOB part of the final store."""
    per_row = 2 * (H * in_itemsize + C * 4)          # double-buffered in + out
    cap = max(128, (vmem_tile_budget // per_row) // 128 * 128)
    for cand in (8192, 4096, 2048, 1024, 512, 256, 128):
        if cand <= cap and pl.cdiv(M, cand) >= 2:
            return cand
    return min(cap, 128 * pl.cdiv(M, 128))           # tiny M: single block


def fuse_decoder_params(params):
    """Fold conv1x1 -> conv1x1 -> Linear into one affine map.

    Call ONCE per weight update (outside the jitted forward).  Returns
    (wt, bt) = ((C, hid_S) fused weight^T, (C, 1) fused bias)."""
    w1, b1, w2, b2, w3, b3 = params
    w_f = w1 @ w2 @ w3                     # (H, C)
    b_f = (b1 @ w2 + b2) @ w3 + b3         # (1, C)
    return w_f.T, b_f.T                    # (C, H), (C, 1)


def decoder_forward(x, fused_params, *, native_layout=False,
                    compute_dtype=jnp.float32):
    """x: (HW, B, T, hid_S); HW must be 100 (module reshapes to a 10x10 grid).

    Returns (B, C, T, HW) matching Decoder.forward (the `graph` argument of
    the PyTorch module is unused), or the kernel-native (C, HW, B, T) layout
    (a free reshape, no transpose op) if native_layout=True."""
    HW, B, T, H = x.shape
    assert HW == 100, "Decoder reshapes the HW axis into a 10x10 spatial grid"
    wt, bt = fused_params
    C = wt.shape[0]

    # Free reshape (no HBM copy): rows ordered (hw, b, t).
    M = B * T * HW
    x_rows = x.reshape(M, H)
    if x_rows.dtype != compute_dtype:
        x_rows = x_rows.astype(compute_dtype)
    if wt.dtype != compute_dtype:
        wt = wt.astype(compute_dtype)
    bt = bt.astype(jnp.float32)            # bias add stays in f32

    in_itemsize = jnp.dtype(compute_dtype).itemsize
    tm = _pick_tm(M, H, C, in_itemsize)
    grid = (pl.cdiv(M, tm),)

    # Explicit VMEM cap (well under v7x's 64 MiB physical / 32 MiB scoped).
    vmem_needed = 2 * (tm * H * in_itemsize + C * tm * 4) + 2 * (C * H + C) * 4
    vmem_limit = min(max(vmem_needed + (2 << 20), 16 << 20), 32 << 20)

    cost = pl.CostEstimate(
        flops=2 * M * H * C,
        transcendentals=0,
        bytes_accessed=(M * H + C * H) * in_itemsize + (M * C + C) * 4,
    )

    out_t = pl.pallas_call(
        _decoder_kernel,
        out_shape=jax.ShapeDtypeStruct((C, M), jnp.float32),
        grid_spec=pltpu.PrefetchScalarGridSpec(
            num_scalar_prefetch=0,
            grid=grid,
            in_specs=[
                pl.BlockSpec((tm, H), lambda i: (i, 0)),  # activation tile
                pl.BlockSpec((C, H), lambda i: (0, 0)),   # fused weight^T
                pl.BlockSpec((C, 1), lambda i: (0, 0)),   # fused bias
            ],
            out_specs=pl.BlockSpec((C, tm), lambda i: (0, i)),
        ),
        compiler_params=pltpu.CompilerParams(
            dimension_semantics=("parallel",),
            vmem_limit_bytes=vmem_limit,
        ),
        cost_estimate=cost,
    )(x_rows, wt, bt)

    out_native = out_t.reshape(C, HW, B, T)            # free reshape
    if native_layout:
        return out_native
    # Module layout; tiny (C*M*4 bytes) permute kept only for spec parity.
    return jnp.transpose(out_native, (2, 0, 3, 1))     # (B, C, T, HW)


def init_decoder_params(key, hid_S, C):
    """Deterministic synthetic parameters (shapes match the nn module).

    Weights are stored pre-transposed as (in_features, out_features) so the
    math is plain row-major matmuls."""
    k1, k2, k3, k4, k5, k6 = jax.random.split(key, 6)
    s1 = 1.0 / jnp.sqrt(hid_S)
    s3 = 1.0 / jnp.sqrt(8.0)
    w1 = jax.random.uniform(k1, (hid_S, hid_S), jnp.float32, -s1, s1)
    b1 = jax.random.uniform(k2, (1, hid_S), jnp.float32, -s1, s1)
    w2 = jax.random.uniform(k3, (hid_S, 8), jnp.float32, -s1, s1)
    b2 = jax.random.uniform(k4, (1, 8), jnp.float32, -s1, s1)
    w3 = jax.random.uniform(k5, (8, C), jnp.float32, -s3, s3)
    b3 = jax.random.uniform(k6, (1, C), jnp.float32, -s3, s3)
    return (w1, b1, w2, b2, w3, b3)


def decoder_reference(x, params):
    """Pure-JAX reference mirroring the PyTorch forward step by step."""
    HW, B, T, H_ = x.shape
    w1, b1, w2, b2, w3, b3 = params
    xp = jnp.transpose(x, (1, 2, 3, 0)).reshape(B * T, H_, 10, 10)
    xc = jnp.transpose(xp, (0, 2, 3, 1))                 # (BT, 10, 10, H_)
    enc_hid = xc @ w1 + b1[0]                            # 1x1 conv_1
    enc_out = enc_hid @ w2 + b2[0]                       # 1x1 conv_2 -> 8
    enc_out = jnp.transpose(enc_out, (0, 3, 1, 2))       # NCHW
    enc_out = enc_out.reshape(B, -1, 8, HW)
    enc_out = jnp.transpose(enc_out, (0, 1, 3, 2))       # (B, T, HW, 8)
    final = enc_out @ w3 + b3[0]                         # (B, T, HW, C)
    return jnp.transpose(final, (0, 3, 1, 2))            # (B, C, T, HW)


if __name__ == "__main__":
    key = jax.random.PRNGKey(0)
    hid_S, C = 32, 4
    B, T, HW = 2, 4, 100  # HW fixed at 100 by the module's 10x10 reshape

    kx, kp = jax.random.split(key)
    x = jax.random.normal(kx, (HW, B, T, hid_S), dtype=jnp.float32)
    params = init_decoder_params(kp, hid_S, C)
    graph = None  # `graph` is unused by Decoder.forward

    # Weight fusion runs ONCE per weight update, outside the jitted hot path.
    fused = jax.block_until_ready(fuse_decoder_params(params))

    fwd = jax.jit(decoder_forward)
    out = jax.block_until_ready(fwd(x, fused))

    ref = decoder_reference(x, params)
    assert out.shape == (B, C, T, HW), out.shape
    assert jnp.allclose(out, ref, atol=1e-4, rtol=1e-4), \
        float(jnp.max(jnp.abs(out - ref)))

    print("KERNEL_OK")
</pallas_src>

<mosaic_0001>
module attributes {stable_mosaic.version = 11 : i64} {
  func.func @_decoder_kernel(%arg0: i32, %arg1: memref<512x32xf32, #tpu.memory_space<vmem>>, %arg2: memref<4x32xf32, #tpu.memory_space<vmem>>, %arg3: memref<4x1xf32, #tpu.memory_space<vmem>>, %arg4: memref<4x512xf32, #tpu.memory_space<vmem>>) attributes {dimension_semantics = [#tpu.dimension_semantics<parallel>], iteration_bounds = array<i64: 2>, scalar_prefetch = 0 : i64, scratch_operands = 0 : i64, tpu.core_type = #tpu.core_type<tc>, window_params = [{transform_indices = @transform_0, window_bounds = array<i64: 512, 32>}, {pipeline_mode = #tpu.pipeline_mode<synchronous>, transform_indices = @transform_1, window_bounds = array<i64: 4, 32>}, {pipeline_mode = #tpu.pipeline_mode<synchronous>, transform_indices = @transform_2, window_bounds = array<i64: 4, 1>}, {transform_indices = @transform_3, window_bounds = array<i64: 4, 512>}]} {
    %c0 = arith.constant 0 : index
    %c0_0 = arith.constant 0 : index
    %0 = vector.load %arg2[%c0, %c0_0] : memref<4x32xf32, #tpu.memory_space<vmem>>, vector<4x32xf32>
    %c0_1 = arith.constant 0 : index
    %c0_2 = arith.constant 0 : index
    %1 = vector.load %arg1[%c0_1, %c0_2] : memref<512x32xf32, #tpu.memory_space<vmem>>, vector<512x32xf32>
    %cst = arith.constant dense<0.000000e+00> : vector<4x512xf32>
    %2 = tpu.matmul %0, %1, %cst {dimension_numbers = #tpu.dot_dimension_numbers<[1], [1], [0], [0], [0, 0, 1, 0], [], []>} : vector<4x32xf32>, vector<512x32xf32>, vector<4x512xf32> -> vector<4x512xf32>
    %c0_3 = arith.constant 0 : index
    %c0_4 = arith.constant 0 : index
    %3 = vector.load %arg3[%c0_3, %c0_4] : memref<4x1xf32, #tpu.memory_space<vmem>>, vector<4x1xf32>
    %4 = vector.broadcast %3 : vector<4x1xf32> to vector<4x512xf32>
    %5 = arith.addf %2, %4 : vector<4x512xf32>
    %c0_5 = arith.constant 0 : index
    %c0_6 = arith.constant 0 : index
    %6 = vector.load %arg4[%c0_5, %c0_6] : memref<4x512xf32, #tpu.memory_space<vmem>>, vector<4x512xf32>
    tpu.vector_store %arg4[%c0_5, %c0_6], %5 {strides = array<i32>} : memref<4x512xf32, #tpu.memory_space<vmem>>, vector<4x512xf32>,
    return
  }
  func.func @transform_0(%arg0: i32) -> (i32, i32) {
    %c0_i32 = arith.constant 0 : i32
    %c0_i32_0 = arith.constant 0 : i32
    return %arg0, %c0_i32 : i32, i32
  }
  func.func @transform_1(%arg0: i32) -> (i32, i32) {
    %c0_i32 = arith.constant 0 : i32
    %c0_i32_0 = arith.constant 0 : i32
    %c0_i32_1 = arith.constant 0 : i32
    return %c0_i32, %c0_i32_0 : i32, i32
  }
  func.func @transform_2(%arg0: i32) -> (i32, i32) {
    %c0_i32 = arith.constant 0 : i32
    %c0_i32_0 = arith.constant 0 : i32
    %c0_i32_1 = arith.constant 0 : i32
    return %c0_i32, %c0_i32_0 : i32, i32
  }
  func.func @transform_3(%arg0: i32) -> (i32, i32) {
    %c0_i32 = arith.constant 0 : i32
    %c0_i32_0 = arith.constant 0 : i32
    return %c0_i32, %arg0 : i32, i32
  }
}

</mosaic_0001>

<bundles_post_ra>
// kernel: decoder_forward.1
= control target key start
LH: loop header
LB: loop body
LE: loop exit
PB: predicated region body
PF: predicated region fallthrough
CT: control target
= control target key end

     0   :  { %s1762_s12 = smov 0   ;;  %s1764_s13 = smov 0   ;;  %s2374_s0 = inlined_call_operand.vmem [shape: f32[800,32], index: 0, kind: input, shape index: {}]   ;;  %s2375_s1 = inlined_call_operand.vmem [shape: f32[4,32], index: 1, kind: input, shape index: {}]   ;;  %s2376_s2 = inlined_call_operand.vmem [shape: f32[4,1], index: 2, kind: input, shape index: {}]   ;;  %s2377_s3 = inlined_call_operand.vmem [shape: f32[4,800], index: 3, kind: output, shape index: {}]  }
   0x1   :  { %s1766_s14 = smov 0  }
   0x2 LB: > { %s1775_s15 = sadd.s32 4294967295, %s1673_s14   ;;  %s1777_s16 = sadd.s32 1, %s1673_s14   ;;  %s1673_s14 = sphi %s1766_s14, %s2393_s14   ;;  %s1669_s13 = sphi %s1764_s13, %s2392_s13   ;;  %s1665_s12 = sphi %s1762_s12, %s2391_s12  }
   0x3   : > { %s85_s17 = ssub.s32 %s1673_s14, %s1777_s16  ;;  %s88_s18 = sadd.s32 1, %s1669_s13 }
   0x4   : > { %p86_p0 = scmp.eq.s32.totalorder %s85_s17, 0  ;;  %p98_p1 = scmp.ne.s32.totalorder %s1669_s13, %s1665_s12 }
   0x5   : > { %p99_p2 = scmp.eq.s32.totalorder %s1775_s15, 1  ;;  %p1163_p3 = scmp.ge.s32.totalorder %s1673_s14, 1 }
   0x6   : > { %s1785_s19 = scalar_select %p86_p0, %s1669_s13, %s88_s18  }
   0x7   : > { %p1787_p4 = por %p99_p2, %p98_p1  ;;  %p146_p5 = scmp.lt.s32.totalorder %s1673_s14, 3 }
   0x9   : > { %p147_p6 = pnand %p1163_p3, %p146_p5 }
   0xa   : > { %s1165_s21 = sshll.u32 (!%p147_p6), %s1775_s15, 6  ;;  %vm263_vm0 = vcmask (!%p147_p6), 261120   ;;  %v1795_v0 = vld [vmem:[%s2375_s1] sm:$0xf] (!%p147_p6)  ;;  %v1739_v2 = vmov (!%p147_p6), 0   ;;  %s170_s30 = sand.u32 (!%p147_p6), 1, %s1665_s12  }
   0xb   : > { %150 = sbr.rel (%p147_p6) target bundleno = 473 (0x1d9), region = 32  ;;  %p178_p7 = scmp.lt.s32.totalorder (!%p147_p6), %s1165_s21, 99  ;;  %1299 = vmatprep.mubr.msk.f32.mxu0 (!%p147_p6), %vm263_vm0, %v1795_v0  ;;  %1333 = vmatprep.mubr.msk.f32.mxu1 (!%p147_p6), %vm263_vm0, %v1795_v0  ;;  %v257_v1 = vld [vmem:[%s2376_s2] sm:$0xf] (!%p147_p6)  ;;  %vm1811_vm1 = vmpackc.low (!%p147_p6), %vm263_vm0, %vm263_vm0 }
   0xc   : > { %1586 = vset.pattern.permute.xlu0 (!%p147_p6), %v1739_v2  ;;  %s1164_s4 = sshll.u32 (!%p147_p6), %s170_s30, 4 }
   0xd   : > { %260 = vperm.xlu0 (!%p147_p6), %1586, %v257_v1   ;;  %s1948_s5 = scalar_lea.vmem (!%p147_p6), [#allocation2], %s1164_s4  }
  0x12   : > { %s2395_s21 = smov (!%p178_p7, %s1165_s21), 99  ;;  %s1234_s6 = sshll.u32 (%p1787_p4), %s1775_s15, 2 }
  0x13   : > { %s1166_s26 = sshll.u32 %s2395_s21, 3  ;;  %s1262_s7 = sshll.u32 (%p1787_p4), %s1775_s15, 4 }
  0x14   : > { %s1807_s29 = scalar_lea.vmem %s2374_s0, %s1166_s26  ;;  %s619_s8 = ssub.s32 (%p1787_p4), 7, %s1234_s6 }
  0x15   : > { %v209_v4 = vld [vmem:[%s1807_s29 + $0x80] sm:$0xff]  ;;  %v210_v5 = vld [vmem:[%s1807_s29 + $0x88] sm:$0xff]  ;;  %v211_v15 = vld [vmem:[%s1807_s29 + $0x90] sm:$0xff]  ;;  %s1959_s11 = scalar_lea.vmem (%p1787_p4), %s2377_s3, %s1262_s7   ;;  %p620_p8 = scmp.lt.s32.totalorder (%p1787_p4), %s619_s8, 4 }
  0x16   : > { %v241_v6 = vld [vmem:[%s1807_s29 + $0x180] sm:$0xff]  ;;  %v1335_v7 = vpack.c.bf16 %v210_v5, %v209_v4  ;;  %v242_v8 = vld [vmem:[%s1807_s29 + $0x188] sm:$0xff]  ;;  %v212_v17 = vld [vmem:[%s1807_s29 + $0x98] sm:$0xff] }
  0x17   : > { %v193_v9 = vld [vmem:[%s1807_s29] sm:$0xff]  ;;  %v194_v10 = vld [vmem:[%s1807_s29 + $0x8] sm:$0xff]  ;;  %v1383_v11 = vpack.c.bf16 %v242_v8, %v241_v6  ;;  %v243_v18 = vld [vmem:[%s1807_s29 + $0x190] sm:$0xff]  ;;  %v1341_v20 = vpack.c.bf16 %v212_v17, %v211_v15 }
  0x18   : > { %v1338_v12 = vpack.c.bf16 %v194_v10, %v193_v9  ;;  %v225_v13 = vld [vmem:[%s1807_s29 + $0x100] sm:$0xff]  ;;  %v226_v14 = vld [vmem:[%s1807_s29 + $0x108] sm:$0xff]  ;;  %1337 = vmatprep.subr.msk.bf16.mxu0 %vm1811_vm1, %v1335_v7  ;;  %v244_v19 = vld [vmem:[%s1807_s29 + $0x198] sm:$0xff] }
  0x19   : > { %v1386_v16 = vpack.c.bf16 %v226_v14, %v225_v13  ;;  %1385 = vmatprep.subr.msk.bf16.mxu1 %vm1811_vm1, %v1383_v11  ;;  %v1389_v21 = vpack.c.bf16 %v244_v19, %v243_v18  ;;  %v195_v22 = vld [vmem:[%s1807_s29 + $0x10] sm:$0xff]  ;;  %v196_v23 = vld [vmem:[%s1807_s29 + $0x18] sm:$0xff]  ;;  %v213_v26 = vld [vmem:[%s1807_s29 + $0xa0] sm:$0xff] }
  0x1a   : > { %1340 = vmatpush3.bf16.xpose.msk.msra.mxu0 %vm1811_vm1, %v1338_v12  ;;  %v227_v24 = vld [vmem:[%s1807_s29 + $0x110] sm:$0xff]  ;;  %v228_v25 = vld [vmem:[%s1807_s29 + $0x118] sm:$0xff]  ;;  %v214_v27 = vld [vmem:[%s1807_s29 + $0xa8] sm:$0xff]  ;;  %v1344_v30 = vpack.c.bf16 %v196_v23, %v195_v22 }
  0x1b   : > { %1388 = vmatpush3.bf16.xpose.msk.msra.mxu1 %vm1811_vm1, %v1386_v16  ;;  %1343 = vmatprep.subr.msk.bf16.mxu0 %vm1811_vm1, %v1341_v20  ;;  %v245_v28 = vld [vmem:[%s1807_s29 + $0x1a0] sm:$0xff]  ;;  %v246_v29 = vld [vmem:[%s1807_s29 + $0x1a8] sm:$0xff]  ;;  %v1392_v31 = vpack.c.bf16 %v228_v25, %v227_v24  ;;  %v1347_v32 = vpack.c.bf16 %v214_v27, %v213_v26  ;;  %v215_v38 = vld [vmem:[%s1807_s29 + $0xb0] sm:$0xff] }
  0x1c   : > { %1391 = vmatprep.subr.msk.bf16.mxu1 %vm1811_vm1, %v1389_v21  ;;  %v1395_v33 = vpack.c.bf16 %v246_v29, %v245_v28  ;;  %v197_v34 = vld [vmem:[%s1807_s29 + $0x20] sm:$0xff]  ;;  %v198_v35 = vld [vmem:[%s1807_s29 + $0x28] sm:$0xff]  ;;  %v216_v39 = vld [vmem:[%s1807_s29 + $0xb8] sm:$0xff] }
  0x1d   : > { %v229_v36 = vld [vmem:[%s1807_s29 + $0x120] sm:$0xff]  ;;  %v230_v37 = vld [vmem:[%s1807_s29 + $0x128] sm:$0xff]  ;;  %v247_v40 = vld [vmem:[%s1807_s29 + $0x1b0] sm:$0xff]  ;;  %v1350_v42 = vpack.c.bf16 %v198_v35, %v197_v34  ;;  %v1353_v44 = vpack.c.bf16 %v216_v39, %v215_v38 }
  0x1e   : > { %v248_v41 = vld [vmem:[%s1807_s29 + $0x1b8] sm:$0xff]  ;;  %v1398_v43 = vpack.c.bf16 %v230_v37, %v229_v36  ;;  %v199_v46 = vld [vmem:[%s1807_s29 + $0x30] sm:$0xff]  ;;  %v217_v50 = vld [vmem:[%s1807_s29 + $0xc0] sm:$0xff] }
  0x1f   : > { %v1401_v45 = vpack.c.bf16 %v248_v41, %v247_v40  ;;  %v200_v47 = vld [vmem:[%s1807_s29 + $0x38] sm:$0xff]  ;;  %v231_v48 = vld [vmem:[%s1807_s29 + $0x130] sm:$0xff]  ;;  %v218_v51 = vld [vmem:[%s1807_s29 + $0xc8] sm:$0xff] }
  0x20   : > { %v232_v49 = vld [vmem:[%s1807_s29 + $0x138] sm:$0xff]  ;;  %v249_v52 = vld [vmem:[%s1807_s29 + $0x1c0] sm:$0xff]  ;;  %v250_v53 = vld [vmem:[%s1807_s29 + $0x1c8] sm:$0xff]  ;;  %v1356_v54 = vpack.c.bf16 %v200_v47, %v199_v46  ;;  %v1359_v56 = vpack.c.bf16 %v218_v51, %v217_v50 }
  0x21   : > { %v1404_v55 = vpack.c.bf16 %v232_v49, %v231_v48  ;;  %v1407_v57 = vpack.c.bf16 %v250_v53, %v249_v52  ;;  %v201_v58 = vld [vmem:[%s1807_s29 + $0x40] sm:$0xff]  ;;  %v202_v59 = vld [vmem:[%s1807_s29 + $0x48] sm:$0xff]  ;;  %v219_v62 = vld [vmem:[%s1807_s29 + $0xd0] sm:$0xff] }
  0x22   : > { %1346 = vmatpush3.bf16.xpose.msk.msra.mxu0 %vm1811_vm1, %v1344_v30  ;;  %v233_v60 = vld [vmem:[%s1807_s29 + $0x140] sm:$0xff]  ;;  %v234_v61 = vld [vmem:[%s1807_s29 + $0x148] sm:$0xff]  ;;  %v220_v63 = vld [vmem:[%s1807_s29 + $0xd8] sm:$0xff]  ;;  %v1362_v4 = vpack.c.bf16 %v202_v59, %v201_v58 }
  0x23   : > { %1394 = vmatpush3.bf16.xpose.msk.msra.mxu1 %vm1811_vm1, %v1392_v31  ;;  %1349 = vmatprep.subr.msk.bf16.mxu0 %vm1811_vm1, %v1347_v32  ;;  %v251_v1 = vld [vmem:[%s1807_s29 + $0x1d0] sm:$0xff]  ;;  %v252_v2 = vld [vmem:[%s1807_s29 + $0x1d8] sm:$0xff]  ;;  %v1410_v5 = vpack.c.bf16 %v234_v61, %v233_v60  ;;  %v1365_v6 = vpack.c.bf16 %v220_v63, %v219_v62  ;;  %v221_v12 = vld [vmem:[%s1807_s29 + $0xe0] sm:$0xff] }
  0x24   : > { %1397 = vmatprep.subr.msk.bf16.mxu1 %vm1811_vm1, %v1395_v33  ;;  %v1413_v7 = vpack.c.bf16 %v252_v2, %v251_v1  ;;  %v203_v8 = vld [vmem:[%s1807_s29 + $0x50] sm:$0xff]  ;;  %v204_v9 = vld [vmem:[%s1807_s29 + $0x58] sm:$0xff]  ;;  %v222_v13 = vld [vmem:[%s1807_s29 + $0xe8] sm:$0xff] }
  0x25   : > { %v235_v10 = vld [vmem:[%s1807_s29 + $0x150] sm:$0xff]  ;;  %v236_v11 = vld [vmem:[%s1807_s29 + $0x158] sm:$0xff]  ;;  %v253_v14 = vld [vmem:[%s1807_s29 + $0x1e0] sm:$0xff]  ;;  %v1368_v16 = vpack.c.bf16 %v204_v9, %v203_v8  ;;  %v1371_v18 = vpack.c.bf16 %v222_v13, %v221_v12 }
  0x26   : > { %v254_v15 = vld [vmem:[%s1807_s29 + $0x1e8] sm:$0xff]  ;;  %v1416_v17 = vpack.c.bf16 %v236_v11, %v235_v10  ;;  %v205_v20 = vld [vmem:[%s1807_s29 + $0x60] sm:$0xff]  ;;  %v223_v24 = vld [vmem:[%s1807_s29 + $0xf0] sm:$0xff] }
  0x27   : > { %v1419_v19 = vpack.c.bf16 %v254_v15, %v253_v14  ;;  %v206_v21 = vld [vmem:[%s1807_s29 + $0x68] sm:$0xff]  ;;  %v237_v22 = vld [vmem:[%s1807_s29 + $0x160] sm:$0xff]  ;;  %v224_v25 = vld [vmem:[%s1807_s29 + $0xf8] sm:$0xff] }
  0x28   : > { %v238_v23 = vld [vmem:[%s1807_s29 + $0x168] sm:$0xff]  ;;  %v255_v26 = vld [vmem:[%s1807_s29 + $0x1f0] sm:$0xff]  ;;  %v256_v27 = vld [vmem:[%s1807_s29 + $0x1f8] sm:$0xff]  ;;  %v1374_v28 = vpack.c.bf16 %v206_v21, %v205_v20  ;;  %v1377_v30 = vpack.c.bf16 %v224_v25, %v223_v24 }
  0x29   : > { %v1422_v29 = vpack.c.bf16 %v238_v23, %v237_v22  ;;  %v1425_v31 = vpack.c.bf16 %v256_v27, %v255_v26  ;;  %v207_v32 = vld [vmem:[%s1807_s29 + $0x70] sm:$0xff]  ;;  %v208_v33 = vld [vmem:[%s1807_s29 + $0x78] sm:$0xff] }
  0x2a   : > { %1352 = vmatpush3.bf16.xpose.msk.msra.mxu0 %vm1811_vm1, %v1350_v42  ;;  %v239_v34 = vld [vmem:[%s1807_s29 + $0x170] sm:$0xff]  ;;  %v240_v35 = vld [vmem:[%s1807_s29 + $0x178] sm:$0xff]  ;;  %v1380_v36 = vpack.c.bf16 %v208_v33, %v207_v32 }
  0x2b   : > { %1400 = vmatpush3.bf16.xpose.msk.msra.mxu1 %vm1811_vm1, %v1398_v43  ;;  %1355 = vmatprep.subr.msk.bf16.mxu0 %vm1811_vm1, %v1353_v44  ;;  %v1428_v37 = vpack.c.bf16 %v240_v35, %v239_v34 }
  0x2c   : > { %1403 = vmatprep.subr.msk.bf16.mxu1 %vm1811_vm1, %v1401_v45 }
  0x32   : > { %1358 = vmatpush3.bf16.xpose.msk.msra.mxu0 %vm1811_vm1, %v1356_v54 }
  0x33   : > { %1406 = vmatpush3.bf16.xpose.msk.msra.mxu1 %vm1811_vm1, %v1404_v55  ;;  %1361 = vmatprep.subr.msk.bf16.mxu0 %vm1811_vm1, %v1359_v56 }
  0x34   : > { %1409 = vmatprep.subr.msk.bf16.mxu1 %vm1811_vm1, %v1407_v57 }
  0x3a   : > { %1364 = vmatpush3.bf16.xpose.msk.msra.mxu0 %vm1811_vm1, %v1362_v4 }
  0x3b   : > { %1412 = vmatpush3.bf16.xpose.msk.msra.mxu1 %vm1811_vm1, %v1410_v5  ;;  %1367 = vmatprep.subr.msk.bf16.mxu0 %vm1811_vm1, %v1365_v6 }
  0x3c   : > { %1415 = vmatprep.subr.msk.bf16.mxu1 %vm1811_vm1, %v1413_v7 }
  0x42   : > { %1370 = vmatpush3.bf16.xpose.msk.msra.mxu0 %vm1811_vm1, %v1368_v16 }
  0x43   : > { %1418 = vmatpush3.bf16.xpose.msk.msra.mxu1 %vm1811_vm1, %v1416_v17  ;;  %1373 = vmatprep.subr.msk.bf16.mxu0 %vm1811_vm1, %v1371_v18 }
  0x44   : > { %1421 = vmatprep.subr.msk.bf16.mxu1 %vm1811_vm1, %v1419_v19 }
  0x4a   : > { %1376 = vmatpush3.bf16.xpose.msk.msra.mxu0 %vm1811_vm1, %v1374_v28 }
  0x4b   : > { %1424 = vmatpush3.bf16.xpose.msk.msra.mxu1 %vm1811_vm1, %v1422_v29  ;;  %1379 = vmatprep.subr.msk.bf16.mxu0 %vm1811_vm1, %v1377_v30 }
  0x4c   : > { %1427 = vmatprep.subr.msk.bf16.mxu1 %vm1811_vm1, %v1425_v31 }
  0x52   : > { %1382 = vmatpush3.bf16.xpose.msk.msra.mxu0 %vm1811_vm1, %v1380_v36 }
  0x53   : > { %1430 = vmatpush3.bf16.xpose.msk.msra.mxu1 %vm1811_vm1, %v1428_v37 }
  0x59   : > { %1300 = vmatmul.mubr.msk.f32.vlgmr.msra.gmra.mrb[0].mxu0 %vm263_vm0, %v1795_v0 }
  0x5a   : > { %1334 = vmatmul.mubr.msk.f32.vlgmr.msra.gmra.mrb[0].mxu1 %vm263_vm0, %v1795_v0 }
  0x8c   : > { %v261_v38 = vpop.permute.xlu0 %260 }
 0x12c   : > { %v525_v39 = vpop.f32.mrb[0].mxu0 }
 0x12d   : > { %v526_v40 = vadd.f32 %v525_v39, %v261_v38  ;;  %v596_v41 = vpop.f32.mrb[0].mxu1  ;;  %v527_v42 = vpop.f32.mrb[1].mxu0  ;;  %617 = sbr.rel (!%p1787_p4) target bundleno = 473 (0x1d9), region = 36 }
 0x12e   : > { %v597_v43 = vadd.f32 %v596_v41, %v261_v38  ;;  %v528_v44 = vadd.f32 %v527_v42, %v261_v38  ;;  %v598_v45 = vpop.f32.mrb[1].mxu1 }
 0x12f   : > { %v599_v46 = vadd.f32 %v598_v45, %v261_v38 }
 0x130   : > { %v605_v47 = vcombine.low %v526_v40, %v528_v44 }
 0x131   : > { %v606_v3 = vcombine.low %v597_v43, %v599_v46 }
 0x132   : > { %609 = vst [vmem:[%s1948_s5] sm:$0xff] %v605_v47 }
 0x133   : > { %610 = vst [vmem:[%s1948_s5 + $0x8] sm:$0xff] %v606_v3 }
 0x134   : > { %s2397_s8 = smov (!%p620_p8, %s619_s8), 4 }
 0x135   : > { %s1235_s12 = sshll.u32 %s2397_s8, 6  ;;  %s1961_s14 = sshll.u32 %s2397_s8, 2 }
 0x136   : > { %p1239_p9 = scmp.eq.s32.totalorder %s1235_s12, 0 }
 0x137   : > { %p630_p10 = scmp.lt.u32.totalorder (!%p1239_p9), %s1961_s14, 8 }
 0x138   : > { %629 = sbr.rel (%p1239_p9) target bundleno = 473 (0x1d9), region = 40 }
 0x13f   : > { %633 = sbr.rel (%p630_p10) target bundleno = 464 (0x1d0), region = 44  ;;  %s1965_s17 = sand.u32 (!%p630_p10), 7, %s1961_s14  }
 0x140   : > { %p649_p11 = scmp.eq.s32.totalorder (!%p630_p10), %s1965_s17, 0  ;;  %p1240_p12 = scmp.ne.s32.totalorder (!%p630_p10), %s1965_s17, 0 }
 0x146   : > { %652 = sbr.rel (%p1240_p12) target bundleno = 393 (0x189), region = 59  ;;  %s653_s15 = sshrl.u32 (!%p1240_p12), %s1961_s14, 3 }
 0x147   : > { %s1972_s18 = sshrl.u32 (!%p1240_p12), %s653_s15, 6 }
 0x148   : > { %p1241_p13 = scmp.le.s32.totalorder (!%p1240_p12), %s1972_s18, 0 }
 0x14d   : > { %1088 = sbr.rel (%p1241_p13) target bundleno = 373 (0x175), region = 140  ;;  %s2381_s20 = smov (!%p1241_p13), %s1959_s11 }
 0x14e   : > { %s2382_s21 = smov (!%p1241_p13), %s1948_s5  ;;  %s1981_s22 = smov (!%p1241_p13), 0  }
 0x14f   : > { %s1983_s23 = smov (!%p1241_p13), 0  }
 0x154 LB: >> { %v666_v0 = vld [vmem:[%s1681_s21] sm:$0xff]  ;;  %v668_v48 = vld [vmem:[%s1681_s21 + $0x8] sm:$0xff]  ;;  %v670_v49 = vld [vmem:[%s1681_s21 + $0x10] sm:$0xff]  ;;  %s794_s24 = sadd.s32 1, %s1685_s22  ;;  %s660_s23 = sadd.s32 1, %s1689_s23   ;;  %s1689_s23 = sphi %s1983_s23, %s660_s23   ;;  %s1685_s22 = sphi %s1981_s22, %s2385_s22   ;;  %s1681_s21 = sphi %s2382_s21, %s2384_s21   ;;  %s1677_s20 = sphi %s2381_s20, %s2383_s20  }
 0x155   : >> { %667 = vst [vmem:[%s1677_s20] sm:$0xff] %v666_v0  ;;  %669 = vst [vmem:[%s1677_s20 + $0x8] sm:$0xff] %v668_v48  ;;  %v672_v50 = vld [vmem:[%s1681_s21 + $0x18] sm:$0xff]  ;;  %v674_v51 = vld [vmem:[%s1681_s21 + $0x20] sm:$0xff]  ;;  %p795_p0 = scmp.ge.s32.totalorder %s794_s24, %s1972_s18  ;;  %p659_p1 = scmp.ge.s32.totalorder %s660_s23, %s1972_s18 }
 0x156   : >> { %671 = vst [vmem:[%s1677_s20 + $0x10] sm:$0xff] %v670_v49  ;;  %v676_v52 = vld [vmem:[%s1681_s21 + $0x28] sm:$0xff]  ;;  %673 = vst [vmem:[%s1677_s20 + $0x18] sm:$0xff] %v672_v50  ;;  %v678_v53 = vld [vmem:[%s1681_s21 + $0x30] sm:$0xff] }
 0x157   : >> { %675 = vst [vmem:[%s1677_s20 + $0x20] sm:$0xff] %v674_v51  ;;  %677 = vst [vmem:[%s1677_s20 + $0x28] sm:$0xff] %v676_v52  ;;  %v680_v54 = vld [vmem:[%s1681_s21 + $0x38] sm:$0xff]  ;;  %v682_v55 = vld [vmem:[%s1681_s21 + $0x40] sm:$0xff]  ;;  %s2399_s24 = smov (%p795_p0, %s794_s24), 0 }
 0x158   : >> { %679 = vst [vmem:[%s1677_s20 + $0x30] sm:$0xff] %v678_v53  ;;  %681 = vst [vmem:[%s1677_s20 + $0x38] sm:$0xff] %v680_v54  ;;  %v684_v56 = vld [vmem:[%s1681_s21 + $0x48] sm:$0xff]  ;;  %v686_v57 = vld [vmem:[%s1681_s21 + $0x50] sm:$0xff]  ;;  %s1242_s25 = sshll.u32 %s2399_s24, 9  ;;  %s2385_s22 = smov %s2399_s24 }
 0x159   : >> { %683 = vst [vmem:[%s1677_s20 + $0x40] sm:$0xff] %v682_v55  ;;  %v688_v58 = vld [vmem:[%s1681_s21 + $0x58] sm:$0xff]  ;;  %685 = vst [vmem:[%s1677_s20 + $0x48] sm:$0xff] %v684_v56  ;;  %v690_v59 = vld [vmem:[%s1681_s21 + $0x60] sm:$0xff]  ;;  %s2039_s26 = scalar_lea.vmem %s1948_s5, %s1242_s25 [#allocation2]   ;;  %s2042_s27 = scalar_lea.vmem %s1959_s11, %s1242_s25  }
 0x15a   : >> { %687 = vst [vmem:[%s1677_s20 + $0x50] sm:$0xff] %v686_v57  ;;  %689 = vst [vmem:[%s1677_s20 + $0x58] sm:$0xff] %v688_v58  ;;  %v692_v60 = vld [vmem:[%s1681_s21 + $0x68] sm:$0xff]  ;;  %v694_v61 = vld [vmem:[%s1681_s21 + $0x70] sm:$0xff] }
 0x15b   : >> { %691 = vst [vmem:[%s1677_s20 + $0x60] sm:$0xff] %v690_v59  ;;  %693 = vst [vmem:[%s1677_s20 + $0x68] sm:$0xff] %v692_v60  ;;  %v696_v62 = vld [vmem:[%s1681_s21 + $0x78] sm:$0xff]  ;;  %v698_v63 = vld [vmem:[%s1681_s21 + $0x80] sm:$0xff] }
 0x15c   : >> { %695 = vst [vmem:[%s1677_s20 + $0x70] sm:$0xff] %v694_v61  ;;  %v700_v1 = vld [vmem:[%s1681_s21 + $0x88] sm:$0xff]  ;;  %697 = vst [vmem:[%s1677_s20 + $0x78] sm:$0xff] %v696_v62  ;;  %v702_v2 = vld [vmem:[%s1681_s21 + $0x90] sm:$0xff] }
 0x15d   : >> { %699 = vst [vmem:[%s1677_s20 + $0x80] sm:$0xff] %v698_v63  ;;  %701 = vst [vmem:[%s1677_s20 + $0x88] sm:$0xff] %v700_v1  ;;  %v704_v4 = vld [vmem:[%s1681_s21 + $0x98] sm:$0xff]  ;;  %v706_v5 = vld [vmem:[%s1681_s21 + $0xa0] sm:$0xff] }
 0x15e   : >> { %703 = vst [vmem:[%s1677_s20 + $0x90] sm:$0xff] %v702_v2  ;;  %705 = vst [vmem:[%s1677_s20 + $0x98] sm:$0xff] %v704_v4  ;;  %v708_v6 = vld [vmem:[%s1681_s21 + $0xa8] sm:$0xff]  ;;  %v710_v7 = vld [vmem:[%s1681_s21 + $0xb0] sm:$0xff] }
 0x15f   : >> { %707 = vst [vmem:[%s1677_s20 + $0xa0] sm:$0xff] %v706_v5  ;;  %v712_v8 = vld [vmem:[%s1681_s21 + $0xb8] sm:$0xff]  ;;  %709 = vst [vmem:[%s1677_s20 + $0xa8] sm:$0xff] %v708_v6  ;;  %v714_v9 = vld [vmem:[%s1681_s21 + $0xc0] sm:$0xff] }
 0x160   : >> { %711 = vst [vmem:[%s1677_s20 + $0xb0] sm:$0xff] %v710_v7  ;;  %713 = vst [vmem:[%s1677_s20 + $0xb8] sm:$0xff] %v712_v8  ;;  %v716_v10 = vld [vmem:[%s1681_s21 + $0xc8] sm:$0xff]  ;;  %v718_v11 = vld [vmem:[%s1681_s21 + $0xd0] sm:$0xff] }
 0x161   : >> { %715 = vst [vmem:[%s1677_s20 + $0xc0] sm:$0xff] %v714_v9  ;;  %717 = vst [vmem:[%s1677_s20 + $0xc8] sm:$0xff] %v716_v10  ;;  %v720_v12 = vld [vmem:[%s1681_s21 + $0xd8] sm:$0xff]  ;;  %v722_v13 = vld [vmem:[%s1681_s21 + $0xe0] sm:$0xff] }
 0x162   : >> { %719 = vst [vmem:[%s1677_s20 + $0xd0] sm:$0xff] %v718_v11  ;;  %v724_v14 = vld [vmem:[%s1681_s21 + $0xe8] sm:$0xff]  ;;  %721 = vst [vmem:[%s1677_s20 + $0xd8] sm:$0xff] %v720_v12  ;;  %v726_v15 = vld [vmem:[%s1681_s21 + $0xf0] sm:$0xff] }
 0x163   : >> { %723 = vst [vmem:[%s1677_s20 + $0xe0] sm:$0xff] %v722_v13  ;;  %725 = vst [vmem:[%s1677_s20 + $0xe8] sm:$0xff] %v724_v14  ;;  %v728_v16 = vld [vmem:[%s1681_s21 + $0xf8] sm:$0xff]  ;;  %v730_v17 = vld [vmem:[%s1681_s21 + $0x100] sm:$0xff] }
 0x164   : >> { %727 = vst [vmem:[%s1677_s20 + $0xf0] sm:$0xff] %v726_v15  ;;  %729 = vst [vmem:[%s1677_s20 + $0xf8] sm:$0xff] %v728_v16  ;;  %v732_v18 = vld [vmem:[%s1681_s21 + $0x108] sm:$0xff]  ;;  %v734_v19 = vld [vmem:[%s1681_s21 + $0x110] sm:$0xff] }
 0x165   : >> { %731 = vst [vmem:[%s1677_s20 + $0x100] sm:$0xff] %v730_v17  ;;  %v736_v20 = vld [vmem:[%s1681_s21 + $0x118] sm:$0xff]  ;;  %733 = vst [vmem:[%s1677_s20 + $0x108] sm:$0xff] %v732_v18  ;;  %v738_v21 = vld [vmem:[%s1681_s21 + $0x120] sm:$0xff] }
 0x166   : >> { %735 = vst [vmem:[%s1677_s20 + $0x110] sm:$0xff] %v734_v19  ;;  %737 = vst [vmem:[%s1677_s20 + $0x118] sm:$0xff] %v736_v20  ;;  %v740_v22 = vld [vmem:[%s1681_s21 + $0x128] sm:$0xff]  ;;  %v742_v23 = vld [vmem:[%s1681_s21 + $0x130] sm:$0xff] }
 0x167   : >> { %739 = vst [vmem:[%s1677_s20 + $0x120] sm:$0xff] %v738_v21  ;;  %741 = vst [vmem:[%s1677_s20 + $0x128] sm:$0xff] %v740_v22  ;;  %v744_v24 = vld [vmem:[%s1681_s21 + $0x138] sm:$0xff]  ;;  %v746_v25 = vld [vmem:[%s1681_s21 + $0x140] sm:$0xff] }
 0x168   : >> { %743 = vst [vmem:[%s1677_s20 + $0x130] sm:$0xff] %v742_v23  ;;  %v748_v26 = vld [vmem:[%s1681_s21 + $0x148] sm:$0xff]  ;;  %745 = vst [vmem:[%s1677_s20 + $0x138] sm:$0xff] %v744_v24  ;;  %v750_v27 = vld [vmem:[%s1681_s21 + $0x150] sm:$0xff] }
 0x169   : >> { %747 = vst [vmem:[%s1677_s20 + $0x140] sm:$0xff] %v746_v25  ;;  %749 = vst [vmem:[%s1677_s20 + $0x148] sm:$0xff] %v748_v26  ;;  %v752_v28 = vld [vmem:[%s1681_s21 + $0x158] sm:$0xff]  ;;  %v754_v29 = vld [vmem:[%s1681_s21 + $0x160] sm:$0xff] }
 0x16a   : >> { %751 = vst [vmem:[%s1677_s20 + $0x150] sm:$0xff] %v750_v27  ;;  %753 = vst [vmem:[%s1677_s20 + $0x158] sm:$0xff] %v752_v28  ;;  %v756_v30 = vld [vmem:[%s1681_s21 + $0x168] sm:$0xff]  ;;  %v758_v31 = vld [vmem:[%s1681_s21 + $0x170] sm:$0xff] }
 0x16b   : >> { %755 = vst [vmem:[%s1677_s20 + $0x160] sm:$0xff] %v754_v29  ;;  %v760_v32 = vld [vmem:[%s1681_s21 + $0x178] sm:$0xff]  ;;  %757 = vst [vmem:[%s1677_s20 + $0x168] sm:$0xff] %v756_v30  ;;  %v762_v33 = vld [vmem:[%s1681_s21 + $0x180] sm:$0xff] }
 0x16c   : >> { %759 = vst [vmem:[%s1677_s20 + $0x170] sm:$0xff] %v758_v31  ;;  %761 = vst [vmem:[%s1677_s20 + $0x178] sm:$0xff] %v760_v32  ;;  %v764_v34 = vld [vmem:[%s1681_s21 + $0x188] sm:$0xff]  ;;  %v766_v35 = vld [vmem:[%s1681_s21 + $0x190] sm:$0xff] }
 0x16d   : >> { %763 = vst [vmem:[%s1677_s20 + $0x180] sm:$0xff] %v762_v33  ;;  %765 = vst [vmem:[%s1677_s20 + $0x188] sm:$0xff] %v764_v34  ;;  %v768_v36 = vld [vmem:[%s1681_s21 + $0x198] sm:$0xff]  ;;  %v770_v37 = vld [vmem:[%s1681_s21 + $0x1a0] sm:$0xff] }
 0x16e   : >> { %767 = vst [vmem:[%s1677_s20 + $0x190] sm:$0xff] %v766_v35  ;;  %v772_v38 = vld [vmem:[%s1681_s21 + $0x1a8] sm:$0xff]  ;;  %769 = vst [vmem:[%s1677_s20 + $0x198] sm:$0xff] %v768_v36  ;;  %v774_v39 = vld [vmem:[%s1681_s21 + $0x1b0] sm:$0xff]  ;;  %662 = sbr.rel (!%p659_p1) target bundleno = 340 (0x154), region = 146 }
 0x16f   : >> { %771 = vst [vmem:[%s1677_s20 + $0x1a0] sm:$0xff] %v770_v37  ;;  %773 = vst [vmem:[%s1677_s20 + $0x1a8] sm:$0xff] %v772_v38  ;;  %v776_v40 = vld [vmem:[%s1681_s21 + $0x1b8] sm:$0xff]  ;;  %v778_v41 = vld [vmem:[%s1681_s21 + $0x1c0] sm:$0xff] }
 0x170   : >> { %775 = vst [vmem:[%s1677_s20 + $0x1b0] sm:$0xff] %v774_v39  ;;  %777 = vst [vmem:[%s1677_s20 + $0x1b8] sm:$0xff] %v776_v40  ;;  %v780_v42 = vld [vmem:[%s1681_s21 + $0x1c8] sm:$0xff]  ;;  %v782_v43 = vld [vmem:[%s1681_s21 + $0x1d0] sm:$0xff] }
 0x171   : >> { %779 = vst [vmem:[%s1677_s20 + $0x1c0] sm:$0xff] %v778_v41  ;;  %v784_v44 = vld [vmem:[%s1681_s21 + $0x1d8] sm:$0xff]  ;;  %781 = vst [vmem:[%s1677_s20 + $0x1c8] sm:$0xff] %v780_v42  ;;  %v786_v45 = vld [vmem:[%s1681_s21 + $0x1e0] sm:$0xff] }
 0x172   : >> { %783 = vst [vmem:[%s1677_s20 + $0x1d0] sm:$0xff] %v782_v43  ;;  %785 = vst [vmem:[%s1677_s20 + $0x1d8] sm:$0xff] %v784_v44  ;;  %v788_v46 = vld [vmem:[%s1681_s21 + $0x1e8] sm:$0xff]  ;;  %v790_v47 = vld [vmem:[%s1681_s21 + $0x1f0] sm:$0xff] }
 0x173   : >> { %787 = vst [vmem:[%s1677_s20 + $0x1e0] sm:$0xff] %v786_v45  ;;  %789 = vst [vmem:[%s1677_s20 + $0x1e8] sm:$0xff] %v788_v46  ;;  %v792_v3 = vld [vmem:[%s1681_s21 + $0x1f8] sm:$0xff]  ;;  %s2384_s21 = smov %s2039_s26 }
 0x174   : >> { %791 = vst [vmem:[%s1677_s20 + $0x1f0] sm:$0xff] %v790_v47  ;;  %793 = vst [vmem:[%s1677_s20 + $0x1f8] sm:$0xff] %v792_v3  ;;  %s2383_s20 = smov %s2042_s27 }
 0x175 PF: > { %s2148_s28 = sand.u32 63, %s653_s15   ;;  %s1263_s29 = sshll.u32 %s1972_s18, 13 }
 0x176   : > { %s805_s30 = sshra.s32 %s1263_s29, 4  ;;  %p1247_p2 = scmp.le.s32.totalorder %s2148_s28, 0 }
 0x177   : > { %s806_s4 = scalar_lea.vmem %s1948_s5, %s805_s30 [#allocation2]   ;;  %s809_s6 = scalar_lea.vmem %s1959_s11, %s805_s30  }
 0x178   : > { %1102 = sbr.rel (%p1247_p2) target bundleno = 393 (0x189), region = 151  ;;  %s1691_s7 = smov (!%p1247_p2), %s809_s6  }
 0x179   : > { %s1695_s8 = smov (!%p1247_p2), %s806_s4   ;;  %s1699_s9 = smov (!%p1247_p2), 0  }
 0x17a   : > { %s1703_s10 = smov (!%p1247_p2), 0  }
 0x17f LB: >> { %v821_v0 = vld [vmem:[%s1697_s8] sm:$0xff]  ;;  %s823_s12 = sadd.s32 1, %s1701_s9  ;;  %s815_s10 = sadd.s32 1, %s1705_s10   ;;  %s1705_s10 = sphi %s1703_s10, %s815_s10   ;;  %s1701_s9 = sphi %s1699_s9, %s1700_s9   ;;  %s1697_s8 = sphi %s1695_s8, %s828_s8   ;;  %s1693_s7 = sphi %s1691_s7, %s829_s7  }
 0x180   : >> { %822 = vst [vmem:[%s1693_s7] sm:$0xff] %v821_v0  ;;  %p824_p3 = scmp.ge.s32.totalorder %s823_s12, %s2148_s28  ;;  %p814_p4 = scmp.ge.s32.totalorder %s815_s10, %s2148_s28 }
 0x182   : >> { %s2401_s12 = smov (%p824_p3, %s823_s12), 0  ;;  %817 = sbr.rel (!%p814_p4) target bundleno = 383 (0x17f), region = 157 }
 0x183   : >> { %s1248_s15 = sshll.u32 %s2401_s12, 3  ;;  %s1700_s9 = smov %s2401_s12  }
 0x184   : >> { %s828_s8 = scalar_lea.vmem %s806_s4, %s1248_s15 [#allocation2]   ;;  %s829_s7 = scalar_lea.vmem %s809_s6, %s1248_s15  }
 0x189 PF: > { %832 = sbr.rel (%p649_p11) target bundleno = 464 (0x1d0), region = 77  ;;  %s2160_s18 = ssub.s32 (!%p649_p11), %s1961_s14, %s1965_s17 }
 0x18a   : > { %s838_s20 = sshrl.u32 (!%p649_p11), %s1961_s14, 3  ;;  %s835_s21 = scalar_lea.vmem (!%p649_p11), %s1948_s5, %s2160_s18 [#allocation2] }
 0x18b   : > { %s837_s22 = scalar_lea.vmem (!%p649_p11), %s1959_s11, %s2160_s18  ;;  %s2169_s23 = sshrl.u32 (!%p649_p11), %s838_s20, 6 }
 0x18c   : > { %p1250_p5 = scmp.le.s32.totalorder (!%p649_p11), %s2169_s23, 0 }
 0x190   : > { %1116 = sbr.rel (%p1250_p5) target bundleno = 440 (0x1b8), region = 162  ;;  %s2386_s24 = smov (!%p1250_p5), %s1959_s11 }
 0x191   : > { %s2387_s25 = smov (!%p1250_p5), %s1948_s5  ;;  %s2178_s26 = smov (!%p1250_p5), 0  }
 0x192   : > { %s2180_s27 = smov (!%p1250_p5), 0  }
 0x197 LB: >> { %v851_v48 = vld [vmem:[%s1713_s25] sm:$0xff]  ;;  %v853_v49 = vld [vmem:[%s1713_s25 + $0x8] sm:$0xff]  ;;  %v855_v50 = vld [vmem:[%s1713_s25 + $0x10] sm:$0xff]  ;;  %s979_s28 = sadd.s32 1, %s1717_s26  ;;  %s845_s27 = sadd.s32 1, %s1721_s27   ;;  %s1721_s27 = sphi %s2180_s27, %s845_s27   ;;  %s1717_s26 = sphi %s2178_s26, %s2390_s26   ;;  %s1713_s25 = sphi %s2387_s25, %s2389_s25   ;;  %s1709_s24 = sphi %s2386_s24, %s2388_s24  }
 0x198   : >> { %852 = vst [vmem:[%s1709_s24] sm:$0xff] %v851_v48  ;;  %854 = vst [vmem:[%s1709_s24 + $0x8] sm:$0xff] %v853_v49  ;;  %v857_v51 = vld [vmem:[%s1713_s25 + $0x18] sm:$0xff]  ;;  %v859_v52 = vld [vmem:[%s1713_s25 + $0x20] sm:$0xff]  ;;  %p980_p6 = scmp.ge.s32.totalorder %s979_s28, %s2169_s23  ;;  %p844_p7 = scmp.ge.s32.totalorder %s845_s27, %s2169_s23 }
 0x199   : >> { %856 = vst [vmem:[%s1709_s24 + $0x10] sm:$0xff] %v855_v50  ;;  %v861_v53 = vld [vmem:[%s1713_s25 + $0x28] sm:$0xff]  ;;  %858 = vst [vmem:[%s1709_s24 + $0x18] sm:$0xff] %v857_v51  ;;  %v863_v54 = vld [vmem:[%s1713_s25 + $0x30] sm:$0xff] }
 0x19a   : >> { %860 = vst [vmem:[%s1709_s24 + $0x20] sm:$0xff] %v859_v52  ;;  %862 = vst [vmem:[%s1709_s24 + $0x28] sm:$0xff] %v861_v53  ;;  %v865_v55 = vld [vmem:[%s1713_s25 + $0x38] sm:$0xff]  ;;  %v867_v56 = vld [vmem:[%s1713_s25 + $0x40] sm:$0xff]  ;;  %s2403_s28 = smov (%p980_p6, %s979_s28), 0 }
 0x19b   : >> { %864 = vst [vmem:[%s1709_s24 + $0x30] sm:$0xff] %v863_v54  ;;  %866 = vst [vmem:[%s1709_s24 + $0x38] sm:$0xff] %v865_v55  ;;  %v869_v57 = vld [vmem:[%s1713_s25 + $0x48] sm:$0xff]  ;;  %v871_v58 = vld [vmem:[%s1713_s25 + $0x50] sm:$0xff]  ;;  %s1251_s29 = sshll.u32 %s2403_s28, 9  ;;  %s2390_s26 = smov %s2403_s28 }
 0x19c   : >> { %868 = vst [vmem:[%s1709_s24 + $0x40] sm:$0xff] %v867_v56  ;;  %v873_v59 = vld [vmem:[%s1713_s25 + $0x58] sm:$0xff]  ;;  %870 = vst [vmem:[%s1709_s24 + $0x48] sm:$0xff] %v869_v57  ;;  %v875_v60 = vld [vmem:[%s1713_s25 + $0x60] sm:$0xff]  ;;  %s2236_s30 = scalar_lea.vmem %s1948_s5, %s1251_s29 [#allocation2]   ;;  %s2239_s4 = scalar_lea.vmem %s1959_s11, %s1251_s29  }
 0x19d   : >> { %872 = vst [vmem:[%s1709_s24 + $0x50] sm:$0xff] %v871_v58  ;;  %874 = vst [vmem:[%s1709_s24 + $0x58] sm:$0xff] %v873_v59  ;;  %v877_v61 = vld [vmem:[%s1713_s25 + $0x68] sm:$0xff]  ;;  %v879_v62 = vld [vmem:[%s1713_s25 + $0x70] sm:$0xff] }
 0x19e   : >> { %876 = vst [vmem:[%s1709_s24 + $0x60] sm:$0xff] %v875_v60  ;;  %878 = vst [vmem:[%s1709_s24 + $0x68] sm:$0xff] %v877_v61  ;;  %v881_v63 = vld [vmem:[%s1713_s25 + $0x78] sm:$0xff]  ;;  %v883_v1 = vld [vmem:[%s1713_s25 + $0x80] sm:$0xff] }
 0x19f   : >> { %880 = vst [vmem:[%s1709_s24 + $0x70] sm:$0xff] %v879_v62  ;;  %v885_v2 = vld [vmem:[%s1713_s25 + $0x88] sm:$0xff]  ;;  %882 = vst [vmem:[%s1709_s24 + $0x78] sm:$0xff] %v881_v63  ;;  %v887_v4 = vld [vmem:[%s1713_s25 + $0x90] sm:$0xff] }
 0x1a0   : >> { %884 = vst [vmem:[%s1709_s24 + $0x80] sm:$0xff] %v883_v1  ;;  %886 = vst [vmem:[%s1709_s24 + $0x88] sm:$0xff] %v885_v2  ;;  %v889_v5 = vld [vmem:[%s1713_s25 + $0x98] sm:$0xff]  ;;  %v891_v6 = vld [vmem:[%s1713_s25 + $0xa0] sm:$0xff] }
 0x1a1   : >> { %888 = vst [vmem:[%s1709_s24 + $0x90] sm:$0xff] %v887_v4  ;;  %890 = vst [vmem:[%s1709_s24 + $0x98] sm:$0xff] %v889_v5  ;;  %v893_v7 = vld [vmem:[%s1713_s25 + $0xa8] sm:$0xff]  ;;  %v895_v8 = vld [vmem:[%s1713_s25 + $0xb0] sm:$0xff] }
 0x1a2   : >> { %892 = vst [vmem:[%s1709_s24 + $0xa0] sm:$0xff] %v891_v6  ;;  %v897_v9 = vld [vmem:[%s1713_s25 + $0xb8] sm:$0xff]  ;;  %894 = vst [vmem:[%s1709_s24 + $0xa8] sm:$0xff] %v893_v7  ;;  %v899_v10 = vld [vmem:[%s1713_s25 + $0xc0] sm:$0xff] }
 0x1a3   : >> { %896 = vst [vmem:[%s1709_s24 + $0xb0] sm:$0xff] %v895_v8  ;;  %898 = vst [vmem:[%s1709_s24 + $0xb8] sm:$0xff] %v897_v9  ;;  %v901_v11 = vld [vmem:[%s1713_s25 + $0xc8] sm:$0xff]  ;;  %v903_v12 = vld [vmem:[%s1713_s25 + $0xd0] sm:$0xff] }
 0x1a4   : >> { %900 = vst [vmem:[%s1709_s24 + $0xc0] sm:$0xff] %v899_v10  ;;  %902 = vst [vmem:[%s1709_s24 + $0xc8] sm:$0xff] %v901_v11  ;;  %v905_v13 = vld [vmem:[%s1713_s25 + $0xd8] sm:$0xff]  ;;  %v907_v14 = vld [vmem:[%s1713_s25 + $0xe0] sm:$0xff] }
 0x1a5   : >> { %904 = vst [vmem:[%s1709_s24 + $0xd0] sm:$0xff] %v903_v12  ;;  %v909_v15 = vld [vmem:[%s1713_s25 + $0xe8] sm:$0xff]  ;;  %906 = vst [vmem:[%s1709_s24 + $0xd8] sm:$0xff] %v905_v13  ;;  %v911_v16 = vld [vmem:[%s1713_s25 + $0xf0] sm:$0xff] }
 0x1a6   : >> { %908 = vst [vmem:[%s1709_s24 + $0xe0] sm:$0xff] %v907_v14  ;;  %910 = vst [vmem:[%s1709_s24 + $0xe8] sm:$0xff] %v909_v15  ;;  %v913_v17 = vld [vmem:[%s1713_s25 + $0xf8] sm:$0xff]  ;;  %v915_v18 = vld [vmem:[%s1713_s25 + $0x100] sm:$0xff] }
 0x1a7   : >> { %912 = vst [vmem:[%s1709_s24 + $0xf0] sm:$0xff] %v911_v16  ;;  %914 = vst [vmem:[%s1709_s24 + $0xf8] sm:$0xff] %v913_v17  ;;  %v917_v19 = vld [vmem:[%s1713_s25 + $0x108] sm:$0xff]  ;;  %v919_v20 = vld [vmem:[%s1713_s25 + $0x110] sm:$0xff] }
 0x1a8   : >> { %916 = vst [vmem:[%s1709_s24 + $0x100] sm:$0xff] %v915_v18  ;;  %v921_v21 = vld [vmem:[%s1713_s25 + $0x118] sm:$0xff]  ;;  %918 = vst [vmem:[%s1709_s24 + $0x108] sm:$0xff] %v917_v19  ;;  %v923_v22 = vld [vmem:[%s1713_s25 + $0x120] sm:$0xff] }
 0x1a9   : >> { %920 = vst [vmem:[%s1709_s24 + $0x110] sm:$0xff] %v919_v20  ;;  %922 = vst [vmem:[%s1709_s24 + $0x118] sm:$0xff] %v921_v21  ;;  %v925_v23 = vld [vmem:[%s1713_s25 + $0x128] sm:$0xff]  ;;  %v927_v24 = vld [vmem:[%s1713_s25 + $0x130] sm:$0xff] }
 0x1aa   : >> { %924 = vst [vmem:[%s1709_s24 + $0x120] sm:$0xff] %v923_v22  ;;  %926 = vst [vmem:[%s1709_s24 + $0x128] sm:$0xff] %v925_v23  ;;  %v929_v25 = vld [vmem:[%s1713_s25 + $0x138] sm:$0xff]  ;;  %v931_v26 = vld [vmem:[%s1713_s25 + $0x140] sm:$0xff] }
 0x1ab   : >> { %928 = vst [vmem:[%s1709_s24 + $0x130] sm:$0xff] %v927_v24  ;;  %v933_v27 = vld [vmem:[%s1713_s25 + $0x148] sm:$0xff]  ;;  %930 = vst [vmem:[%s1709_s24 + $0x138] sm:$0xff] %v929_v25  ;;  %v935_v28 = vld [vmem:[%s1713_s25 + $0x150] sm:$0xff] }
 0x1ac   : >> { %932 = vst [vmem:[%s1709_s24 + $0x140] sm:$0xff] %v931_v26  ;;  %934 = vst [vmem:[%s1709_s24 + $0x148] sm:$0xff] %v933_v27  ;;  %v937_v29 = vld [vmem:[%s1713_s25 + $0x158] sm:$0xff]  ;;  %v939_v30 = vld [vmem:[%s1713_s25 + $0x160] sm:$0xff] }
 0x1ad   : >> { %936 = vst [vmem:[%s1709_s24 + $0x150] sm:$0xff] %v935_v28  ;;  %938 = vst [vmem:[%s1709_s24 + $0x158] sm:$0xff] %v937_v29  ;;  %v941_v31 = vld [vmem:[%s1713_s25 + $0x168] sm:$0xff]  ;;  %v943_v32 = vld [vmem:[%s1713_s25 + $0x170] sm:$0xff] }
 0x1ae   : >> { %940 = vst [vmem:[%s1709_s24 + $0x160] sm:$0xff] %v939_v30  ;;  %v945_v33 = vld [vmem:[%s1713_s25 + $0x178] sm:$0xff]  ;;  %942 = vst [vmem:[%s1709_s24 + $0x168] sm:$0xff] %v941_v31  ;;  %v947_v34 = vld [vmem:[%s1713_s25 + $0x180] sm:$0xff] }
 0x1af   : >> { %944 = vst [vmem:[%s1709_s24 + $0x170] sm:$0xff] %v943_v32  ;;  %946 = vst [vmem:[%s1709_s24 + $0x178] sm:$0xff] %v945_v33  ;;  %v949_v35 = vld [vmem:[%s1713_s25 + $0x188] sm:$0xff]  ;;  %v951_v36 = vld [vmem:[%s1713_s25 + $0x190] sm:$0xff] }
 0x1b0   : >> { %948 = vst [vmem:[%s1709_s24 + $0x180] sm:$0xff] %v947_v34  ;;  %950 = vst [vmem:[%s1709_s24 + $0x188] sm:$0xff] %v949_v35  ;;  %v953_v37 = vld [vmem:[%s1713_s25 + $0x198] sm:$0xff]  ;;  %v955_v38 = vld [vmem:[%s1713_s25 + $0x1a0] sm:$0xff] }
 0x1b1   : >> { %952 = vst [vmem:[%s1709_s24 + $0x190] sm:$0xff] %v951_v36  ;;  %v957_v39 = vld [vmem:[%s1713_s25 + $0x1a8] sm:$0xff]  ;;  %954 = vst [vmem:[%s1709_s24 + $0x198] sm:$0xff] %v953_v37  ;;  %v959_v40 = vld [vmem:[%s1713_s25 + $0x1b0] sm:$0xff]  ;;  %847 = sbr.rel (!%p844_p7) target bundleno = 407 (0x197), region = 168 }
 0x1b2   : >> { %956 = vst [vmem:[%s1709_s24 + $0x1a0] sm:$0xff] %v955_v38  ;;  %958 = vst [vmem:[%s1709_s24 + $0x1a8] sm:$0xff] %v957_v39  ;;  %v961_v41 = vld [vmem:[%s1713_s25 + $0x1b8] sm:$0xff]  ;;  %v963_v42 = vld [vmem:[%s1713_s25 + $0x1c0] sm:$0xff] }
 0x1b3   : >> { %960 = vst [vmem:[%s1709_s24 + $0x1b0] sm:$0xff] %v959_v40  ;;  %962 = vst [vmem:[%s1709_s24 + $0x1b8] sm:$0xff] %v961_v41  ;;  %v965_v43 = vld [vmem:[%s1713_s25 + $0x1c8] sm:$0xff]  ;;  %v967_v44 = vld [vmem:[%s1713_s25 + $0x1d0] sm:$0xff] }
 0x1b4   : >> { %964 = vst [vmem:[%s1709_s24 + $0x1c0] sm:$0xff] %v963_v42  ;;  %v969_v45 = vld [vmem:[%s1713_s25 + $0x1d8] sm:$0xff]  ;;  %966 = vst [vmem:[%s1709_s24 + $0x1c8] sm:$0xff] %v965_v43  ;;  %v971_v46 = vld [vmem:[%s1713_s25 + $0x1e0] sm:$0xff] }
 0x1b5   : >> { %968 = vst [vmem:[%s1709_s24 + $0x1d0] sm:$0xff] %v967_v44  ;;  %970 = vst [vmem:[%s1709_s24 + $0x1d8] sm:$0xff] %v969_v45  ;;  %v973_v47 = vld [vmem:[%s1713_s25 + $0x1e8] sm:$0xff]  ;;  %v975_v3 = vld [vmem:[%s1713_s25 + $0x1f0] sm:$0xff] }
 0x1b6   : >> { %972 = vst [vmem:[%s1709_s24 + $0x1e0] sm:$0xff] %v971_v46  ;;  %974 = vst [vmem:[%s1709_s24 + $0x1e8] sm:$0xff] %v973_v47  ;;  %v977_v0 = vld [vmem:[%s1713_s25 + $0x1f8] sm:$0xff]  ;;  %s2389_s25 = smov %s2236_s30 }
 0x1b7   : >> { %976 = vst [vmem:[%s1709_s24 + $0x1f0] sm:$0xff] %v975_v3  ;;  %978 = vst [vmem:[%s1709_s24 + $0x1f8] sm:$0xff] %v977_v0  ;;  %s2388_s24 = smov %s2239_s4 }
 0x1b8 PF: > { %s2345_s6 = sand.u32 63, %s838_s20   ;;  %s1265_s7 = sshll.u32 %s2169_s23, 13 }
 0x1b9   : > { %s990_s8 = sshra.s32 %s1265_s7, 4  ;;  %p1256_p8 = scmp.le.s32.totalorder %s2345_s6, 0 }
 0x1ba   : > { %s991_s9 = scalar_lea.vmem %s1948_s5, %s990_s8 [#allocation2]   ;;  %s994_s10 = scalar_lea.vmem %s1959_s11, %s990_s8  }
 0x1bb   : > { %1130 = sbr.rel (%p1256_p8) target bundleno = 460 (0x1cc), region = 173  ;;  %s1723_s12 = smov (!%p1256_p8), %s994_s10  }
 0x1bc   : > { %s1727_s15 = smov (!%p1256_p8), %s991_s9   ;;  %s1731_s28 = smov (!%p1256_p8), 0  }
 0x1bd   : > { %s1735_s27 = smov (!%p1256_p8), 0  }
 0x1c2 LB: >> { %v1006_v48 = vld [vmem:[%s1729_s15] sm:$0xff]  ;;  %s1008_s20 = sadd.s32 1, %s1733_s28  ;;  %s1000_s27 = sadd.s32 1, %s1737_s27   ;;  %s1737_s27 = sphi %s1735_s27, %s1000_s27   ;;  %s1733_s28 = sphi %s1731_s28, %s1732_s28   ;;  %s1729_s15 = sphi %s1727_s15, %s1013_s15   ;;  %s1725_s12 = sphi %s1723_s12, %s1014_s12  }
 0x1c3   : >> { %1007 = vst [vmem:[%s1725_s12] sm:$0xff] %v1006_v48  ;;  %p1009_p9 = scmp.ge.s32.totalorder %s1008_s20, %s2345_s6  ;;  %p999_p10 = scmp.ge.s32.totalorder %s1000_s27, %s2345_s6 }
 0x1c5   : >> { %s2405_s20 = smov (%p1009_p9, %s1008_s20), 0  ;;  %1002 = sbr.rel (!%p999_p10) target bundleno = 450 (0x1c2), region = 179 }
 0x1c6   : >> { %s1257_s23 = sshll.u32 %s2405_s20, 3  ;;  %s1732_s28 = smov %s2405_s20  }
 0x1c7   : >> { %s1013_s15 = scalar_lea.vmem %s991_s9, %s1257_s23 [#allocation2]   ;;  %s1014_s12 = scalar_lea.vmem %s994_s10, %s1257_s23  }
 0x1cc PF: > { %s1740_s24 = smov 0  }
 0x1cd   : > { %s1015_s25 = sshllo.u32 %s1740_s24, %s1965_s17 }
 0x1ce   : > { %v1024_v49 = vld [vmem:[%s835_s21] sm:%s1015_s25] }
 0x1cf   : > { %1025 = vst [vmem:[%s837_s22] sm:%s1015_s25] %v1024_v49 }
 0x1d0 PF: > { %p1259_p11 = scmp.ge.u32.totalorder %s1961_s14, 8 }
 0x1d1   : > { %s1741_s26 = smov (!%p1259_p11), 0  }
 0x1d2   : > { %636 = sbr.rel (%p1259_p11) target bundleno = 473 (0x1d9), region = 48  ;;  %s637_s29 = sshllo.u32 (!%p1259_p11), %s1741_s26, %s1961_s14 }
 0x1d3   : > { %v646_v50 = vld [vmem:[%s1948_s5] sm:%s637_s29] (!%p1259_p11) }
 0x1d4   : > { %647 = vst [vmem:[%s1959_s11] sm:%s637_s29] (!%p1259_p11), %v646_v50 }
 0x1d9 PF: > { %p10_p12 = scmp.ge.s32.totalorder %s1777_s16, 4   ;;  %s2391_s12 = smov %s1669_s13 }
 0x1da   : > { %s2392_s13 = smov %s1785_s19  ;;  %s2393_s14 = smov %s1777_s16 }
 0x1db   :  { %12 = sbr.rel (!%p10_p12) target bundleno = 2 (0x2), region = 190 }

</bundles_post_ra>
